<compile_context>
chip_gen: v7x
topology: tpu7x:2x2x1
jax: 0.10.0
libtpu: 0.0.40
codegen_flags: <defaults>
</compile_context>

<pallas_src>
import math

import jax
import jax.numpy as jnp
from jax.experimental import pallas as pl
from jax.experimental.pallas import tpu as pltpu


# ----------------------------- kernels -------------------------------------


def _pool_kernel(x_ref, mean_ref):
    """Per-(b, c) spatial mean. x_ref: (rt, HW) native dtype; mean_ref: (rt, 1) f32."""
    s = jnp.sum(x_ref[...], axis=-1, keepdims=True, dtype=jnp.float32)
    mean_ref[...] = s * (1.0 / x_ref.shape[-1])


def _make_scale_kernel(hw, fold):
    """Broadcast scale on the folded (rt, fold*hw) view.

    Lane l of a folded row belongs to original channel-row l // hw, so the
    (rt, fold) gate tile is expanded across lanes with a short iota/where
    chain and the output is written as one full-width, lane-dense store.
    """

    def kernel(x_ref, g_ref, o_ref):
        x = x_ref[...]
        g = g_ref[...]                      # (rt, fold), x's dtype
        if fold == 1:
            o_ref[...] = x * g              # g is (rt, 1): plain lane broadcast
        else:
            lane = jax.lax.broadcasted_iota(jnp.int32, x.shape, 1)
            gw = g[:, 0:1]
            for j in range(1, fold):        # fold-1 selects (fold is small/static)
                gw = jnp.where(lane >= j * hw, g[:, j:j + 1], gw)
            o_ref[...] = x * gw

    return kernel


# --------------------------- tiling helpers ---------------------------------


def _tpu_config():
    """Generation-aware tiling knobs (block size, VMEM limit, #TensorCores)."""
    kind = ""
    try:
        kind = jax.devices()[0].device_kind.lower()
    except Exception:
        pass
    if "v7" in kind or "7x" in kind:
        # 2 TCs/chip, 64 MiB VMEM/TC, 3.2 TB/s HBM: bigger blocks, even steps.
        return {"target_bytes": 6 << 20, "vmem_limit": 48 << 20, "ncores": 2}
    if "v4" in kind:
        # v4 megacore also exposes 2 TensorCores behind one device.
        return {"target_bytes": 4 << 20, "vmem_limit": 48 << 20, "ncores": 2}
    # v5e / v6e / unknown: single TensorCore, no forced grid split.
    return {"target_bytes": 4 << 20, "vmem_limit": 48 << 20, "ncores": 1}


def _sublane_multiple(dtype):
    """Row-tile granularity: 8 for 4-byte, 16 for bf16, 32 for 1-byte dtypes."""
    return max(8, 32 // jnp.dtype(dtype).itemsize)


def _pick_row_tile(rows, lanes, itemsize, *, sub, target_bytes, ncores):
    """Largest sublane-multiple row tile giving an ~target_bytes (rt, lanes) block.

    On 2-TensorCore parts the step count is nudged to a multiple of `ncores`
    so the "parallel" grid axis splits evenly across cores.
    """
    row_bytes = max(1, lanes * itemsize)
    rt = (target_bytes // row_bytes) // sub * sub
    rt = max(sub, rt)
    if rt >= rows:
        if ncores > 1 and rows >= ncores * sub:
            rt = -(-rows // ncores)
            rt = -(-rt // sub) * sub
            if rt < rows:
                return rt
        return rows
    if ncores > 1:
        steps = -(-rows // rt)
        if steps % ncores:
            steps2 = -(-steps // ncores) * ncores
            rt2 = -(-rows // steps2)
            rt2 = -(-rt2 // sub) * sub
            if sub <= rt2 < rows and (-(-rows // rt2)) % ncores == 0:
                rt = rt2
    return rt


def _fold_factor(rows, hw):
    """Smallest f with (f*hw) % 128 == 0 and rows % f == 0 (lane-dense view)."""
    if hw % 128 == 0:
        return 1
    f = 128 // math.gcd(hw, 128)
    if f <= 16 and rows % f == 0:
        return f
    return 1  # e.g. hw = 49: fall back to the (correct) masked-store layout


# ------------------------------ wrapper -------------------------------------


def _excitation(means, w1, w2):
    """gate = sigmoid(relu(means @ w1.T) @ w2.T) in f32, PyTorch (out, in) weights."""
    hid = jax.lax.dot_general(means, w1.astype(jnp.float32),
                              (((1,), (1,)), ((), ())),
                              preferred_element_type=jnp.float32)
    hid = jnp.maximum(hid, 0.0)
    gate = jax.lax.dot_general(hid, w2.astype(jnp.float32),
                               (((1,), (1,)), ((), ())),
                               preferred_element_type=jnp.float32)
    return jax.nn.sigmoid(gate)


def se_block(x, w1, w2, *, use_pallas=None, donate_x=False):
    """SEBlock forward: x * sigmoid(fc(mean_hw(x)))[:, :, None, None].

    Args:
      x:  (B, C, H, W) NCHW activations.
      w1: (C//r, C)  first Linear weight (PyTorch (out, in) layout, no bias).
      w2: (C, C//r)  second Linear weight (PyTorch (out, in) layout, no bias).
      use_pallas: None = auto (pure-JAX fallback for tiny tensors), else bool.
      donate_x: alias the scale output onto x's HBM buffer (only if the caller
        no longer needs x).
    """
    b, c, h, w = x.shape
    hw = h * w
    rows = b * c
    itemsize = jnp.dtype(x.dtype).itemsize

    if use_pallas is None:
        # Two kernel launches + pipeline fill dominate tiny tensors.
        use_pallas = rows * hw * itemsize >= (1 << 20)

    if not use_pallas:
        means = jnp.mean(x.astype(jnp.float32), axis=(2, 3))
        gate = _excitation(means, w1, w2)
        return (x * gate[:, :, None, None].astype(x.dtype)).astype(x.dtype)

    cfg = _tpu_config()
    sub = _sublane_multiple(x.dtype)
    cparams = pltpu.CompilerParams(
        dimension_semantics=("parallel",),
        vmem_limit_bytes=cfg["vmem_limit"],
    )

    # ---- squeeze: per-(b, c) spatial mean, f32-accumulated streaming reduce.
    x2 = x.reshape(rows, hw)
    rt_p = _pick_row_tile(rows, hw, itemsize, sub=sub,
                          target_bytes=cfg["target_bytes"], ncores=cfg["ncores"])
    means = pl.pallas_call(
        _pool_kernel,
        out_shape=jax.ShapeDtypeStruct((rows, 1), jnp.float32),
        grid=(pl.cdiv(rows, rt_p),),
        in_specs=[pl.BlockSpec((rt_p, hw), lambda i: (i, 0))],
        out_specs=pl.BlockSpec((rt_p, 1), lambda i: (i, 0)),
        compiler_params=cparams,
        cost_estimate=pl.CostEstimate(
            flops=rows * hw, transcendentals=0,
            bytes_accessed=rows * hw * itemsize + rows * 4),
    )(x2)

    # ---- excitation: tiny MLP on the (B, C) pooled vector, hoisted to JAX.
    gate = _excitation(means.reshape(b, c), w1, w2).astype(x.dtype)

    # ---- scale: lane-dense broadcast multiply on a folded (rows/f, f*HW) view.
    fold = _fold_factor(rows, hw)
    rows_f = rows // fold
    lanes = fold * hw
    x2f = x.reshape(rows_f, lanes)
    gate_f = gate.reshape(rows_f, fold)

    rt_s = _pick_row_tile(rows_f, lanes, itemsize, sub=sub,
                          target_bytes=cfg["target_bytes"], ncores=cfg["ncores"])
    out2 = pl.pallas_call(
        _make_scale_kernel(hw, fold),
        out_shape=jax.ShapeDtypeStruct((rows_f, lanes), x.dtype),
        grid=(pl.cdiv(rows_f, rt_s),),
        in_specs=[pl.BlockSpec((rt_s, lanes), lambda i: (i, 0)),
                  # Gate tile is tiny (rt_s * fold elems); per-step DMA is noise.
                  pl.BlockSpec((rt_s, fold), lambda i: (i, 0))],
        out_specs=pl.BlockSpec((rt_s, lanes), lambda i: (i, 0)),
        compiler_params=cparams,
        cost_estimate=pl.CostEstimate(
            flops=rows * hw, transcendentals=0,
            bytes_accessed=2 * rows * hw * itemsize + rows * itemsize),
        input_output_aliases=({0: 0} if donate_x else {}),
    )(x2f, gate_f)

    return out2.reshape(b, c, h, w)


def se_block_ref(x, w1, w2):
    """Pure-JAX reference mirroring the PyTorch forward."""
    y = jnp.mean(x, axis=(2, 3))                       # (B, C)
    y = jnp.maximum(y @ w1.T, 0.0)                     # Linear + ReLU
    y = jax.nn.sigmoid(y @ w2.T)                       # Linear + Sigmoid
    return x * y[:, :, None, None]


if __name__ == "__main__":
    key = jax.random.PRNGKey(0)

    def make_case(B, C, H, W, reduction, k):
        Cr = max(1, C // reduction)
        k1, k2, k3 = jax.random.split(k, 3)
        x = jax.random.normal(k1, (B, C, H, W), dtype=jnp.float32)
        w1 = 0.1 * jax.random.normal(k2, (Cr, C), dtype=jnp.float32)
        w2 = 0.1 * jax.random.normal(k3, (C, Cr), dtype=jnp.float32)
        return x, w1, w2

    k0, k1, k2 = jax.random.split(key, 3)
    # Tolerance note: the tiny MLP runs at TPU default matmul precision in
    # both paths; 1e-4 cleanly separates precision noise from real bugs.
    TOL = dict(atol=1e-4, rtol=1e-4)

    # Case 1: HW = 8*8 = 64 (not a multiple of 128) -> folded lane-dense path.
    x, w1, w2 = make_case(4, 256, 8, 8, 16, k0)
    out = jax.block_until_ready(se_block(x, w1, w2, use_pallas=True))
    ref = se_block_ref(x, w1, w2)
    assert out.shape == x.shape
    assert jnp.allclose(out, ref, **TOL), "fold-path mismatch"

    # Case 2: HW = 16*16 = 256 (multiple of 128) -> plain lane-dense path.
    x, w1, w2 = make_case(2, 32, 16, 16, 16, k1)
    out = jax.block_until_ready(se_block(x, w1, w2, use_pallas=True))
    ref = se_block_ref(x, w1, w2)
    assert jnp.allclose(out, ref, **TOL), "plain-path mismatch"

    # Case 3: tiny tensor -> automatic pure-JAX small-problem fallback.
    x, w1, w2 = make_case(2, 4, 16, 16, 2, k2)
    out = jax.block_until_ready(se_block(x, w1, w2))
    ref = se_block_ref(x, w1, w2)
    assert jnp.allclose(out, ref, **TOL), "fallback mismatch"

    print("KERNEL_OK")
</pallas_src>

<mosaic_0001>
module attributes {stable_mosaic.version = 11 : i64} {
  func.func @_pool_kernel(%arg0: i32, %arg1: memref<1024x64xf32, #tpu.memory_space<vmem>>, %arg2: memref<1024x1xf32, #tpu.memory_space<vmem>>) attributes {dimension_semantics = [#tpu.dimension_semantics<parallel>], iteration_bounds = array<i64: 1>, scalar_prefetch = 0 : i64, scratch_operands = 0 : i64, tpu.core_type = #tpu.core_type<tc>, window_params = [{transform_indices = @transform_0, window_bounds = array<i64: 1024, 64>}, {transform_indices = @transform_1, window_bounds = array<i64: 1024, 1>}]} {
    %c0 = arith.constant 0 : index
    %c0_0 = arith.constant 0 : index
    %0 = vector.load %arg1[%c0, %c0_0] : memref<1024x64xf32, #tpu.memory_space<vmem>>, vector<1024x64xf32>
    %cst = arith.constant dense<0.000000e+00> : vector<1024xf32>
    %1 = vector.multi_reduction <add>, %0, %cst [1] : vector<1024x64xf32> to vector<1024xf32>
    %2 = vector.shape_cast %1 : vector<1024xf32> to vector<1024x1xf32>
    %cst_1 = arith.constant 1.562500e-02 : f32
    %3 = vector.broadcast %cst_1 : f32 to vector<1024x1xf32>
    %4 = arith.mulf %2, %3 : vector<1024x1xf32>
    %c0_2 = arith.constant 0 : index
    %c0_3 = arith.constant 0 : index
    %5 = vector.load %arg2[%c0_2, %c0_3] : memref<1024x1xf32, #tpu.memory_space<vmem>>, vector<1024x1xf32>
    tpu.vector_store %arg2[%c0_2, %c0_3], %4 {strides = array<i32>} : memref<1024x1xf32, #tpu.memory_space<vmem>>, vector<1024x1xf32>,
    return
  }
  func.func @transform_0(%arg0: i32) -> (i32, i32) {
    %c0_i32 = arith.constant 0 : i32
    %c0_i32_0 = arith.constant 0 : i32
    return %arg0, %c0_i32 : i32, i32
  }
  func.func @transform_1(%arg0: i32) -> (i32, i32) {
    %c0_i32 = arith.constant 0 : i32
    %c0_i32_0 = arith.constant 0 : i32
    return %arg0, %c0_i32 : i32, i32
  }
}

</mosaic_0001>

<bundles_post_ra>
// kernel: tpu_custom_call.1
= control target key start
LH: loop header
LB: loop body
LE: loop exit
PB: predicated region body
PF: predicated region fallthrough
CT: control target
= control target key end

     0   :  { %vm136_vm0 = vcmask 523264   ;;  %vm649_vm1 = vcmask 7168   ;;  %s1816_s0 = inlined_call_operand.vmem [shape: f32[1024,64], index: 0, kind: input, shape index: {}]   ;;  %s1817_s1 = inlined_call_operand.vmem [shape: f32[1024,1], index: 1, kind: output, shape index: {}]  }
   0x1   :  { %v10_v0 = vld [vmem:[%s1816_s0 + $0x10] sm:$0xff]  ;;  %v8_v1 = vld [vmem:[%s1816_s0] sm:$0xff]  ;;  %v11_v2 = vld [vmem:[%s1816_s0 + $0x18] sm:$0xff] }
   0x2   :  { %v143_v3 = vsel %vm136_vm0, %v10_v0, 0.0  ;;  %v137_v4 = vsel %vm136_vm0, %v8_v1, 0.0  ;;  %v9_v5 = vld [vmem:[%s1816_s0 + $0x8] sm:$0xff]  ;;  %v146_v6 = vsel %vm136_vm0, %v11_v2, 0.0  ;;  %v12_v9 = vld [vmem:[%s1816_s0 + $0x20] sm:$0xff]  ;;  %v15_v12 = vld [vmem:[%s1816_s0 + $0x38] sm:$0xff] }
   0x3   :  { %144 = vadd.xlane.f32.xlu1 %v143_v3  ;;  %138 = vadd.xlane.f32.xlu0 %v137_v4  ;;  %v140_v7 = vsel %vm136_vm0, %v9_v5, 0.0  ;;  %v13_v8 = vld [vmem:[%s1816_s0 + $0x28] sm:$0xff]  ;;  %v149_v11 = vsel %vm136_vm0, %v12_v9, 0.0  ;;  %v14_v13 = vld [vmem:[%s1816_s0 + $0x30] sm:$0xff]  ;;  %v158_v14 = vsel %vm136_vm0, %v15_v12, 0.0  ;;  %v16_v17 = vld [vmem:[%s1816_s0 + $0x40] sm:$0xff] }
   0x4   :  { %v152_v10 = vsel %vm136_vm0, %v13_v8, 0.0  ;;  %v155_v15 = vsel %vm136_vm0, %v14_v13, 0.0  ;;  %v17_v16 = vld [vmem:[%s1816_s0 + $0x48] sm:$0xff]  ;;  %v161_v19 = vsel %vm136_vm0, %v16_v17, 0.0  ;;  %v19_v20 = vld [vmem:[%s1816_s0 + $0x58] sm:$0xff]  ;;  %v18_v21 = vld [vmem:[%s1816_s0 + $0x50] sm:$0xff] }
   0x5   :  { %v164_v18 = vsel %vm136_vm0, %v17_v16, 0.0  ;;  %v170_v22 = vsel %vm136_vm0, %v19_v20, 0.0  ;;  %v167_v23 = vsel %vm136_vm0, %v18_v21, 0.0  ;;  %v21_v24 = vld [vmem:[%s1816_s0 + $0x68] sm:$0xff]  ;;  %v20_v25 = vld [vmem:[%s1816_s0 + $0x60] sm:$0xff]  ;;  %v23_v28 = vld [vmem:[%s1816_s0 + $0x78] sm:$0xff] }
   0x6   :  { %v176_v26 = vsel %vm136_vm0, %v21_v24, 0.0  ;;  %v173_v27 = vsel %vm136_vm0, %v20_v25, 0.0  ;;  %v22_v29 = vld [vmem:[%s1816_s0 + $0x70] sm:$0xff]  ;;  %v182_v30 = vsel %vm136_vm0, %v23_v28, 0.0  ;;  %v25_v32 = vld [vmem:[%s1816_s0 + $0x88] sm:$0xff]  ;;  %v24_v33 = vld [vmem:[%s1816_s0 + $0x80] sm:$0xff] }
   0x7   :  { %147 = vadd.xlane.f32.xlu1 %v146_v6  ;;  %141 = vadd.xlane.f32.xlu0 %v140_v7  ;;  %v179_v31 = vsel %vm136_vm0, %v22_v29, 0.0  ;;  %v188_v34 = vsel %vm136_vm0, %v25_v32, 0.0  ;;  %v185_v35 = vsel %vm136_vm0, %v24_v33, 0.0  ;;  %v27_v36 = vld [vmem:[%s1816_s0 + $0x98] sm:$0xff]  ;;  %v26_v37 = vld [vmem:[%s1816_s0 + $0x90] sm:$0xff]  ;;  %v29_v40 = vld [vmem:[%s1816_s0 + $0xa8] sm:$0xff] }
   0x8   :  { %v194_v38 = vsel %vm136_vm0, %v27_v36, 0.0  ;;  %v191_v39 = vsel %vm136_vm0, %v26_v37, 0.0  ;;  %v28_v41 = vld [vmem:[%s1816_s0 + $0xa0] sm:$0xff]  ;;  %v200_v42 = vsel %vm136_vm0, %v29_v40, 0.0  ;;  %v31_v44 = vld [vmem:[%s1816_s0 + $0xb8] sm:$0xff]  ;;  %v30_v45 = vld [vmem:[%s1816_s0 + $0xb0] sm:$0xff] }
   0x9   :  { %v197_v43 = vsel %vm136_vm0, %v28_v41, 0.0  ;;  %v206_v46 = vsel %vm136_vm0, %v31_v44, 0.0  ;;  %v203_v47 = vsel %vm136_vm0, %v30_v45, 0.0  ;;  %v33_v48 = vld [vmem:[%s1816_s0 + $0xc8] sm:$0xff]  ;;  %v32_v49 = vld [vmem:[%s1816_s0 + $0xc0] sm:$0xff]  ;;  %v35_v52 = vld [vmem:[%s1816_s0 + $0xd8] sm:$0xff] }
   0xa   :  { %v212_v50 = vsel %vm136_vm0, %v33_v48, 0.0  ;;  %v209_v51 = vsel %vm136_vm0, %v32_v49, 0.0  ;;  %v34_v53 = vld [vmem:[%s1816_s0 + $0xd0] sm:$0xff]  ;;  %v218_v54 = vsel %vm136_vm0, %v35_v52, 0.0  ;;  %v37_v56 = vld [vmem:[%s1816_s0 + $0xe8] sm:$0xff]  ;;  %v36_v57 = vld [vmem:[%s1816_s0 + $0xe0] sm:$0xff] }
   0xb   :  { %153 = vadd.xlane.f32.xlu1 %v152_v10  ;;  %150 = vadd.xlane.f32.xlu0 %v149_v11  ;;  %v215_v55 = vsel %vm136_vm0, %v34_v53, 0.0  ;;  %v224_v58 = vsel %vm136_vm0, %v37_v56, 0.0  ;;  %v221_v59 = vsel %vm136_vm0, %v36_v57, 0.0  ;;  %v39_v60 = vld [vmem:[%s1816_s0 + $0xf8] sm:$0xff]  ;;  %v38_v61 = vld [vmem:[%s1816_s0 + $0xf0] sm:$0xff]  ;;  %v41_v0 = vld [vmem:[%s1816_s0 + $0x108] sm:$0xff] }
   0xc   :  { %v230_v62 = vsel %vm136_vm0, %v39_v60, 0.0  ;;  %v227_v63 = vsel %vm136_vm0, %v38_v61, 0.0  ;;  %v40_v1 = vld [vmem:[%s1816_s0 + $0x100] sm:$0xff]  ;;  %v236_v2 = vsel %vm136_vm0, %v41_v0, 0.0  ;;  %v43_v4 = vld [vmem:[%s1816_s0 + $0x118] sm:$0xff]  ;;  %v42_v5 = vld [vmem:[%s1816_s0 + $0x110] sm:$0xff] }
   0xd   :  { %v233_v3 = vsel %vm136_vm0, %v40_v1, 0.0  ;;  %v242_v6 = vsel %vm136_vm0, %v43_v4, 0.0  ;;  %v239_v7 = vsel %vm136_vm0, %v42_v5, 0.0  ;;  %v45_v8 = vld [vmem:[%s1816_s0 + $0x128] sm:$0xff]  ;;  %v44_v9 = vld [vmem:[%s1816_s0 + $0x120] sm:$0xff]  ;;  %v47_v12 = vld [vmem:[%s1816_s0 + $0x138] sm:$0xff] }
   0xe   :  { %v248_v10 = vsel %vm136_vm0, %v45_v8, 0.0  ;;  %v245_v11 = vsel %vm136_vm0, %v44_v9, 0.0  ;;  %v46_v13 = vld [vmem:[%s1816_s0 + $0x130] sm:$0xff]  ;;  %v49_v16 = vld [vmem:[%s1816_s0 + $0x148] sm:$0xff]  ;;  %v48_v17 = vld [vmem:[%s1816_s0 + $0x140] sm:$0xff] }
   0xf   :  { %159 = vadd.xlane.f32.xlu1 %v158_v14  ;;  %156 = vadd.xlane.f32.xlu0 %v155_v15  ;;  %v254_v14 = vsel %vm136_vm0, %v47_v12, 0.0  ;;  %v251_v15 = vsel %vm136_vm0, %v46_v13, 0.0  ;;  %v51_v20 = vld [vmem:[%s1816_s0 + $0x158] sm:$0xff]  ;;  %v50_v21 = vld [vmem:[%s1816_s0 + $0x150] sm:$0xff]  ;;  %v53_v24 = vld [vmem:[%s1816_s0 + $0x168] sm:$0xff] }
  0x10   :  { %v52_v25 = vld [vmem:[%s1816_s0 + $0x160] sm:$0xff]  ;;  %v55_v28 = vld [vmem:[%s1816_s0 + $0x178] sm:$0xff]  ;;  %v54_v29 = vld [vmem:[%s1816_s0 + $0x170] sm:$0xff] }
  0x11   :  { %v57_v32 = vld [vmem:[%s1816_s0 + $0x188] sm:$0xff]  ;;  %v56_v33 = vld [vmem:[%s1816_s0 + $0x180] sm:$0xff]  ;;  %v59_v36 = vld [vmem:[%s1816_s0 + $0x198] sm:$0xff] }
  0x12   :  { %v58_v37 = vld [vmem:[%s1816_s0 + $0x190] sm:$0xff]  ;;  %v61_v40 = vld [vmem:[%s1816_s0 + $0x1a8] sm:$0xff]  ;;  %v60_v41 = vld [vmem:[%s1816_s0 + $0x1a0] sm:$0xff] }
  0x13   :  { %165 = vadd.xlane.f32.xlu1 %v164_v18  ;;  %162 = vadd.xlane.f32.xlu0 %v161_v19  ;;  %v260_v18 = vsel %vm136_vm0, %v49_v16, 0.0  ;;  %v257_v19 = vsel %vm136_vm0, %v48_v17, 0.0  ;;  %v63_v44 = vld [vmem:[%s1816_s0 + $0x1b8] sm:$0xff]  ;;  %v62_v45 = vld [vmem:[%s1816_s0 + $0x1b0] sm:$0xff]  ;;  %v65_v48 = vld [vmem:[%s1816_s0 + $0x1c8] sm:$0xff] }
  0x14   :  { %v64_v49 = vld [vmem:[%s1816_s0 + $0x1c0] sm:$0xff]  ;;  %v67_v52 = vld [vmem:[%s1816_s0 + $0x1d8] sm:$0xff]  ;;  %v66_v53 = vld [vmem:[%s1816_s0 + $0x1d0] sm:$0xff] }
  0x15   :  { %v69_v56 = vld [vmem:[%s1816_s0 + $0x1e8] sm:$0xff]  ;;  %v68_v57 = vld [vmem:[%s1816_s0 + $0x1e0] sm:$0xff]  ;;  %v71_v60 = vld [vmem:[%s1816_s0 + $0x1f8] sm:$0xff] }
  0x16   :  { %v70_v61 = vld [vmem:[%s1816_s0 + $0x1f0] sm:$0xff]  ;;  %v73_v0 = vld [vmem:[%s1816_s0 + $0x208] sm:$0xff]  ;;  %v72_v1 = vld [vmem:[%s1816_s0 + $0x200] sm:$0xff] }
  0x17   :  { %171 = vadd.xlane.f32.xlu1 %v170_v22  ;;  %168 = vadd.xlane.f32.xlu0 %v167_v23  ;;  %v266_v22 = vsel %vm136_vm0, %v51_v20, 0.0  ;;  %v263_v23 = vsel %vm136_vm0, %v50_v21, 0.0  ;;  %v75_v4 = vld [vmem:[%s1816_s0 + $0x218] sm:$0xff]  ;;  %v74_v5 = vld [vmem:[%s1816_s0 + $0x210] sm:$0xff]  ;;  %v77_v8 = vld [vmem:[%s1816_s0 + $0x228] sm:$0xff] }
  0x18   :  { %v76_v9 = vld [vmem:[%s1816_s0 + $0x220] sm:$0xff]  ;;  %v79_v12 = vld [vmem:[%s1816_s0 + $0x238] sm:$0xff]  ;;  %v78_v13 = vld [vmem:[%s1816_s0 + $0x230] sm:$0xff] }
  0x19   :  { %v81_v16 = vld [vmem:[%s1816_s0 + $0x248] sm:$0xff]  ;;  %v80_v17 = vld [vmem:[%s1816_s0 + $0x240] sm:$0xff] }
  0x1a   :  { %v356_v20 = vsel %vm136_vm0, %v81_v16, 0.0  ;;  %v353_v21 = vsel %vm136_vm0, %v80_v17, 0.0  ;;  %v97_v16 = vld [vmem:[%s1816_s0 + $0x2c8] sm:$0xff]  ;;  %v96_v17 = vld [vmem:[%s1816_s0 + $0x2c0] sm:$0xff] }
  0x1b   :  { %177 = vadd.xlane.f32.xlu1 %v176_v26  ;;  %174 = vadd.xlane.f32.xlu0 %v173_v27  ;;  %v272_v26 = vsel %vm136_vm0, %v53_v24, 0.0  ;;  %v269_v27 = vsel %vm136_vm0, %v52_v25, 0.0  ;;  %v83_v24 = vld [vmem:[%s1816_s0 + $0x258] sm:$0xff]  ;;  %v82_v25 = vld [vmem:[%s1816_s0 + $0x250] sm:$0xff] }
  0x1f   :  { %183 = vadd.xlane.f32.xlu1 %v182_v30  ;;  %180 = vadd.xlane.f32.xlu0 %v179_v31  ;;  %v278_v30 = vsel %vm136_vm0, %v55_v28, 0.0  ;;  %v275_v31 = vsel %vm136_vm0, %v54_v29, 0.0  ;;  %v362_v28 = vsel %vm136_vm0, %v83_v24, 0.0  ;;  %v359_v29 = vsel %vm136_vm0, %v82_v25, 0.0  ;;  %v99_v24 = vld [vmem:[%s1816_s0 + $0x2d8] sm:$0xff]  ;;  %v98_v25 = vld [vmem:[%s1816_s0 + $0x2d0] sm:$0xff] }
  0x23   :  { %189 = vadd.xlane.f32.xlu1 %v188_v34  ;;  %186 = vadd.xlane.f32.xlu0 %v185_v35  ;;  %v284_v34 = vsel %vm136_vm0, %v57_v32, 0.0  ;;  %v281_v35 = vsel %vm136_vm0, %v56_v33, 0.0  ;;  %v85_v32 = vld [vmem:[%s1816_s0 + $0x268] sm:$0xff]  ;;  %v84_v33 = vld [vmem:[%s1816_s0 + $0x260] sm:$0xff] }
  0x27   :  { %195 = vadd.xlane.f32.xlu1 %v194_v38  ;;  %192 = vadd.xlane.f32.xlu0 %v191_v39  ;;  %v290_v38 = vsel %vm136_vm0, %v59_v36, 0.0  ;;  %v287_v39 = vsel %vm136_vm0, %v58_v37, 0.0  ;;  %v368_v36 = vsel %vm136_vm0, %v85_v32, 0.0  ;;  %v365_v37 = vsel %vm136_vm0, %v84_v33, 0.0  ;;  %v101_v32 = vld [vmem:[%s1816_s0 + $0x2e8] sm:$0xff]  ;;  %v100_v33 = vld [vmem:[%s1816_s0 + $0x2e0] sm:$0xff] }
  0x2b   :  { %201 = vadd.xlane.f32.xlu1 %v200_v42  ;;  %198 = vadd.xlane.f32.xlu0 %v197_v43  ;;  %v296_v42 = vsel %vm136_vm0, %v61_v40, 0.0  ;;  %v293_v43 = vsel %vm136_vm0, %v60_v41, 0.0  ;;  %v87_v40 = vld [vmem:[%s1816_s0 + $0x278] sm:$0xff]  ;;  %v86_v41 = vld [vmem:[%s1816_s0 + $0x270] sm:$0xff] }
  0x2f   :  { %207 = vadd.xlane.f32.xlu1 %v206_v46  ;;  %204 = vadd.xlane.f32.xlu0 %v203_v47  ;;  %v302_v46 = vsel %vm136_vm0, %v63_v44, 0.0  ;;  %v299_v47 = vsel %vm136_vm0, %v62_v45, 0.0  ;;  %v374_v44 = vsel %vm136_vm0, %v87_v40, 0.0  ;;  %v371_v45 = vsel %vm136_vm0, %v86_v41, 0.0  ;;  %v103_v40 = vld [vmem:[%s1816_s0 + $0x2f8] sm:$0xff]  ;;  %v102_v41 = vld [vmem:[%s1816_s0 + $0x2f0] sm:$0xff] }
  0x33   :  { %213 = vadd.xlane.f32.xlu1 %v212_v50  ;;  %210 = vadd.xlane.f32.xlu0 %v209_v51  ;;  %v308_v50 = vsel %vm136_vm0, %v65_v48, 0.0  ;;  %v305_v51 = vsel %vm136_vm0, %v64_v49, 0.0  ;;  %v89_v48 = vld [vmem:[%s1816_s0 + $0x288] sm:$0xff]  ;;  %v88_v49 = vld [vmem:[%s1816_s0 + $0x280] sm:$0xff] }
  0x37   :  { %219 = vadd.xlane.f32.xlu1 %v218_v54  ;;  %216 = vadd.xlane.f32.xlu0 %v215_v55  ;;  %v314_v54 = vsel %vm136_vm0, %v67_v52, 0.0  ;;  %v311_v55 = vsel %vm136_vm0, %v66_v53, 0.0  ;;  %v380_v52 = vsel %vm136_vm0, %v89_v48, 0.0  ;;  %v377_v53 = vsel %vm136_vm0, %v88_v49, 0.0  ;;  %v105_v48 = vld [vmem:[%s1816_s0 + $0x308] sm:$0xff]  ;;  %v104_v49 = vld [vmem:[%s1816_s0 + $0x300] sm:$0xff] }
  0x3b   :  { %225 = vadd.xlane.f32.xlu1 %v224_v58  ;;  %222 = vadd.xlane.f32.xlu0 %v221_v59  ;;  %v320_v58 = vsel %vm136_vm0, %v69_v56, 0.0  ;;  %v317_v59 = vsel %vm136_vm0, %v68_v57, 0.0  ;;  %v91_v56 = vld [vmem:[%s1816_s0 + $0x298] sm:$0xff]  ;;  %v90_v57 = vld [vmem:[%s1816_s0 + $0x290] sm:$0xff] }
  0x3f   :  { %231 = vadd.xlane.f32.xlu1 %v230_v62  ;;  %228 = vadd.xlane.f32.xlu0 %v227_v63  ;;  %v326_v62 = vsel %vm136_vm0, %v71_v60, 0.0  ;;  %v323_v63 = vsel %vm136_vm0, %v70_v61, 0.0  ;;  %v386_v60 = vsel %vm136_vm0, %v91_v56, 0.0  ;;  %v383_v61 = vsel %vm136_vm0, %v90_v57, 0.0  ;;  %v107_v56 = vld [vmem:[%s1816_s0 + $0x318] sm:$0xff]  ;;  %v106_v57 = vld [vmem:[%s1816_s0 + $0x310] sm:$0xff] }
  0x43   :  { %237 = vadd.xlane.f32.xlu1 %v236_v2  ;;  %234 = vadd.xlane.f32.xlu0 %v233_v3  ;;  %v332_v2 = vsel %vm136_vm0, %v73_v0, 0.0  ;;  %v329_v3 = vsel %vm136_vm0, %v72_v1, 0.0  ;;  %v93_v0 = vld [vmem:[%s1816_s0 + $0x2a8] sm:$0xff]  ;;  %v92_v1 = vld [vmem:[%s1816_s0 + $0x2a0] sm:$0xff] }
  0x47   :  { %243 = vadd.xlane.f32.xlu1 %v242_v6  ;;  %240 = vadd.xlane.f32.xlu0 %v239_v7  ;;  %v338_v6 = vsel %vm136_vm0, %v75_v4, 0.0  ;;  %v335_v7 = vsel %vm136_vm0, %v74_v5, 0.0  ;;  %v392_v4 = vsel %vm136_vm0, %v93_v0, 0.0  ;;  %v389_v5 = vsel %vm136_vm0, %v92_v1, 0.0  ;;  %v109_v0 = vld [vmem:[%s1816_s0 + $0x328] sm:$0xff]  ;;  %v108_v1 = vld [vmem:[%s1816_s0 + $0x320] sm:$0xff] }
  0x4b   :  { %249 = vadd.xlane.f32.xlu1 %v248_v10  ;;  %246 = vadd.xlane.f32.xlu0 %v245_v11  ;;  %v344_v10 = vsel %vm136_vm0, %v77_v8, 0.0  ;;  %v341_v11 = vsel %vm136_vm0, %v76_v9, 0.0  ;;  %v95_v8 = vld [vmem:[%s1816_s0 + $0x2b8] sm:$0xff]  ;;  %v94_v9 = vld [vmem:[%s1816_s0 + $0x2b0] sm:$0xff] }
  0x4f   :  { %255 = vadd.xlane.f32.xlu1 %v254_v14  ;;  %252 = vadd.xlane.f32.xlu0 %v251_v15  ;;  %v350_v14 = vsel %vm136_vm0, %v79_v12, 0.0  ;;  %v347_v15 = vsel %vm136_vm0, %v78_v13, 0.0  ;;  %v398_v12 = vsel %vm136_vm0, %v95_v8, 0.0  ;;  %v395_v13 = vsel %vm136_vm0, %v94_v9, 0.0  ;;  %v111_v8 = vld [vmem:[%s1816_s0 + $0x338] sm:$0xff]  ;;  %v110_v9 = vld [vmem:[%s1816_s0 + $0x330] sm:$0xff] }
  0x53   :  { %261 = vadd.xlane.f32.xlu1 %v260_v18  ;;  %258 = vadd.xlane.f32.xlu0 %v257_v19 }
  0x57   :  { %267 = vadd.xlane.f32.xlu1 %v266_v22  ;;  %264 = vadd.xlane.f32.xlu0 %v263_v23 }
  0x5b   :  { %273 = vadd.xlane.f32.xlu1 %v272_v26  ;;  %270 = vadd.xlane.f32.xlu0 %v269_v27 }
  0x5f   :  { %279 = vadd.xlane.f32.xlu1 %v278_v30  ;;  %276 = vadd.xlane.f32.xlu0 %v275_v31 }
  0x63   :  { %285 = vadd.xlane.f32.xlu1 %v284_v34  ;;  %282 = vadd.xlane.f32.xlu0 %v281_v35 }
  0x67   :  { %291 = vadd.xlane.f32.xlu1 %v290_v38  ;;  %288 = vadd.xlane.f32.xlu0 %v287_v39 }
  0x6b   :  { %297 = vadd.xlane.f32.xlu1 %v296_v42  ;;  %294 = vadd.xlane.f32.xlu0 %v293_v43 }
  0x6f   :  { %303 = vadd.xlane.f32.xlu1 %v302_v46  ;;  %300 = vadd.xlane.f32.xlu0 %v299_v47 }
  0x73   :  { %309 = vadd.xlane.f32.xlu1 %v308_v50  ;;  %306 = vadd.xlane.f32.xlu0 %v305_v51 }
  0x77   :  { %315 = vadd.xlane.f32.xlu1 %v314_v54  ;;  %312 = vadd.xlane.f32.xlu0 %v311_v55 }
  0x7b   :  { %321 = vadd.xlane.f32.xlu1 %v320_v58  ;;  %318 = vadd.xlane.f32.xlu0 %v317_v59 }
  0x7f   :  { %327 = vadd.xlane.f32.xlu1 %v326_v62  ;;  %324 = vadd.xlane.f32.xlu0 %v323_v63 }
  0x83   :  { %333 = vadd.xlane.f32.xlu1 %v332_v2  ;;  %330 = vadd.xlane.f32.xlu0 %v329_v3 }
  0x87   :  { %339 = vadd.xlane.f32.xlu1 %v338_v6  ;;  %336 = vadd.xlane.f32.xlu0 %v335_v7 }
  0x8b   :  { %345 = vadd.xlane.f32.xlu1 %v344_v10  ;;  %342 = vadd.xlane.f32.xlu0 %v341_v11 }
  0x8f   :  { %351 = vadd.xlane.f32.xlu1 %v350_v14  ;;  %348 = vadd.xlane.f32.xlu0 %v347_v15 }
  0x90   :  { %v145_v18 = vpop.xlane.xlu1 %144  ;;  %v139_v19 = vpop.xlane.xlu0 %138 }
  0x91   :  { %v523_v22 = vmul.f32 0.015625, %v145_v18  ;;  %v521_v23 = vmul.f32 0.015625, %v139_v19 }
  0x93   :  { %652 = vst.msk [vmem:[%s1817_s1 + $0x10] sm:$0xff] %vm649_vm1, %v523_v22  ;;  %650 = vst.msk [vmem:[%s1817_s1] sm:$0xff] %vm649_vm1, %v521_v23  ;;  %357 = vadd.xlane.f32.xlu1 %v356_v20  ;;  %354 = vadd.xlane.f32.xlu0 %v353_v21  ;;  %v404_v20 = vsel %vm136_vm0, %v97_v16, 0.0  ;;  %v401_v21 = vsel %vm136_vm0, %v96_v17, 0.0  ;;  %v113_v16 = vld [vmem:[%s1816_s0 + $0x348] sm:$0xff]  ;;  %v112_v17 = vld [vmem:[%s1816_s0 + $0x340] sm:$0xff] }
  0x94   :  { %v148_v26 = vpop.xlane.xlu1 %147  ;;  %v142_v27 = vpop.xlane.xlu0 %141 }
  0x95   :  { %v524_v30 = vmul.f32 0.015625, %v148_v26  ;;  %v522_v31 = vmul.f32 0.015625, %v142_v27 }
  0x97   :  { %653 = vst.msk [vmem:[%s1817_s1 + $0x18] sm:$0xff] %vm649_vm1, %v524_v30  ;;  %651 = vst.msk [vmem:[%s1817_s1 + $0x8] sm:$0xff] %vm649_vm1, %v522_v31  ;;  %363 = vadd.xlane.f32.xlu1 %v362_v28  ;;  %360 = vadd.xlane.f32.xlu0 %v359_v29  ;;  %v410_v28 = vsel %vm136_vm0, %v99_v24, 0.0  ;;  %v407_v29 = vsel %vm136_vm0, %v98_v25, 0.0  ;;  %v115_v24 = vld [vmem:[%s1816_s0 + $0x358] sm:$0xff]  ;;  %v114_v25 = vld [vmem:[%s1816_s0 + $0x350] sm:$0xff] }
  0x98   :  { %v154_v34 = vpop.xlane.xlu1 %153  ;;  %v151_v35 = vpop.xlane.xlu0 %150 }
  0x99   :  { %v526_v38 = vmul.f32 0.015625, %v154_v34  ;;  %v525_v39 = vmul.f32 0.015625, %v151_v35 }
  0x9b   :  { %655 = vst.msk [vmem:[%s1817_s1 + $0x28] sm:$0xff] %vm649_vm1, %v526_v38  ;;  %654 = vst.msk [vmem:[%s1817_s1 + $0x20] sm:$0xff] %vm649_vm1, %v525_v39  ;;  %369 = vadd.xlane.f32.xlu1 %v368_v36  ;;  %366 = vadd.xlane.f32.xlu0 %v365_v37  ;;  %v416_v36 = vsel %vm136_vm0, %v101_v32, 0.0  ;;  %v413_v37 = vsel %vm136_vm0, %v100_v33, 0.0  ;;  %v117_v32 = vld [vmem:[%s1816_s0 + $0x368] sm:$0xff]  ;;  %v116_v33 = vld [vmem:[%s1816_s0 + $0x360] sm:$0xff] }
  0x9c   :  { %v160_v42 = vpop.xlane.xlu1 %159  ;;  %v157_v43 = vpop.xlane.xlu0 %156 }
  0x9d   :  { %v528_v46 = vmul.f32 0.015625, %v160_v42  ;;  %v527_v47 = vmul.f32 0.015625, %v157_v43 }
  0x9f   :  { %657 = vst.msk [vmem:[%s1817_s1 + $0x38] sm:$0xff] %vm649_vm1, %v528_v46  ;;  %656 = vst.msk [vmem:[%s1817_s1 + $0x30] sm:$0xff] %vm649_vm1, %v527_v47  ;;  %375 = vadd.xlane.f32.xlu1 %v374_v44  ;;  %372 = vadd.xlane.f32.xlu0 %v371_v45  ;;  %v422_v44 = vsel %vm136_vm0, %v103_v40, 0.0  ;;  %v419_v45 = vsel %vm136_vm0, %v102_v41, 0.0  ;;  %v119_v40 = vld [vmem:[%s1816_s0 + $0x378] sm:$0xff]  ;;  %v118_v41 = vld [vmem:[%s1816_s0 + $0x370] sm:$0xff] }
  0xa0   :  { %v166_v50 = vpop.xlane.xlu1 %165  ;;  %v163_v51 = vpop.xlane.xlu0 %162 }
  0xa1   :  { %v530_v54 = vmul.f32 0.015625, %v166_v50  ;;  %v529_v55 = vmul.f32 0.015625, %v163_v51 }
  0xa3   :  { %659 = vst.msk [vmem:[%s1817_s1 + $0x48] sm:$0xff] %vm649_vm1, %v530_v54  ;;  %658 = vst.msk [vmem:[%s1817_s1 + $0x40] sm:$0xff] %vm649_vm1, %v529_v55  ;;  %381 = vadd.xlane.f32.xlu1 %v380_v52  ;;  %378 = vadd.xlane.f32.xlu0 %v377_v53  ;;  %v428_v52 = vsel %vm136_vm0, %v105_v48, 0.0  ;;  %v425_v53 = vsel %vm136_vm0, %v104_v49, 0.0  ;;  %v121_v48 = vld [vmem:[%s1816_s0 + $0x388] sm:$0xff]  ;;  %v120_v49 = vld [vmem:[%s1816_s0 + $0x380] sm:$0xff] }
  0xa4   :  { %v172_v58 = vpop.xlane.xlu1 %171  ;;  %v169_v59 = vpop.xlane.xlu0 %168 }
  0xa5   :  { %v532_v62 = vmul.f32 0.015625, %v172_v58  ;;  %v531_v63 = vmul.f32 0.015625, %v169_v59 }
  0xa7   :  { %661 = vst.msk [vmem:[%s1817_s1 + $0x58] sm:$0xff] %vm649_vm1, %v532_v62  ;;  %660 = vst.msk [vmem:[%s1817_s1 + $0x50] sm:$0xff] %vm649_vm1, %v531_v63  ;;  %387 = vadd.xlane.f32.xlu1 %v386_v60  ;;  %384 = vadd.xlane.f32.xlu0 %v383_v61  ;;  %v434_v60 = vsel %vm136_vm0, %v107_v56, 0.0  ;;  %v431_v61 = vsel %vm136_vm0, %v106_v57, 0.0  ;;  %v123_v56 = vld [vmem:[%s1816_s0 + $0x398] sm:$0xff]  ;;  %v122_v57 = vld [vmem:[%s1816_s0 + $0x390] sm:$0xff] }
  0xa8   :  { %v178_v2 = vpop.xlane.xlu1 %177  ;;  %v175_v3 = vpop.xlane.xlu0 %174 }
  0xa9   :  { %v534_v6 = vmul.f32 0.015625, %v178_v2  ;;  %v533_v7 = vmul.f32 0.015625, %v175_v3 }
  0xab   :  { %663 = vst.msk [vmem:[%s1817_s1 + $0x68] sm:$0xff] %vm649_vm1, %v534_v6  ;;  %662 = vst.msk [vmem:[%s1817_s1 + $0x60] sm:$0xff] %vm649_vm1, %v533_v7  ;;  %393 = vadd.xlane.f32.xlu1 %v392_v4  ;;  %390 = vadd.xlane.f32.xlu0 %v389_v5  ;;  %v440_v4 = vsel %vm136_vm0, %v109_v0, 0.0  ;;  %v437_v5 = vsel %vm136_vm0, %v108_v1, 0.0  ;;  %v125_v0 = vld [vmem:[%s1816_s0 + $0x3a8] sm:$0xff]  ;;  %v124_v1 = vld [vmem:[%s1816_s0 + $0x3a0] sm:$0xff] }
  0xac   :  { %v184_v10 = vpop.xlane.xlu1 %183  ;;  %v181_v11 = vpop.xlane.xlu0 %180 }
  0xad   :  { %v536_v14 = vmul.f32 0.015625, %v184_v10  ;;  %v535_v15 = vmul.f32 0.015625, %v181_v11 }
  0xaf   :  { %665 = vst.msk [vmem:[%s1817_s1 + $0x78] sm:$0xff] %vm649_vm1, %v536_v14  ;;  %664 = vst.msk [vmem:[%s1817_s1 + $0x70] sm:$0xff] %vm649_vm1, %v535_v15  ;;  %399 = vadd.xlane.f32.xlu1 %v398_v12  ;;  %396 = vadd.xlane.f32.xlu0 %v395_v13  ;;  %v446_v12 = vsel %vm136_vm0, %v111_v8, 0.0  ;;  %v443_v13 = vsel %vm136_vm0, %v110_v9, 0.0  ;;  %v127_v8 = vld [vmem:[%s1816_s0 + $0x3b8] sm:$0xff]  ;;  %v126_v9 = vld [vmem:[%s1816_s0 + $0x3b0] sm:$0xff] }
  0xb0   :  { %v190_v18 = vpop.xlane.xlu1 %189  ;;  %v187_v19 = vpop.xlane.xlu0 %186 }
  0xb1   :  { %v538_v22 = vmul.f32 0.015625, %v190_v18  ;;  %v537_v23 = vmul.f32 0.015625, %v187_v19 }
  0xb3   :  { %667 = vst.msk [vmem:[%s1817_s1 + $0x88] sm:$0xff] %vm649_vm1, %v538_v22  ;;  %666 = vst.msk [vmem:[%s1817_s1 + $0x80] sm:$0xff] %vm649_vm1, %v537_v23  ;;  %405 = vadd.xlane.f32.xlu1 %v404_v20  ;;  %402 = vadd.xlane.f32.xlu0 %v401_v21  ;;  %v452_v20 = vsel %vm136_vm0, %v113_v16, 0.0  ;;  %v449_v21 = vsel %vm136_vm0, %v112_v17, 0.0  ;;  %v129_v16 = vld [vmem:[%s1816_s0 + $0x3c8] sm:$0xff]  ;;  %v128_v17 = vld [vmem:[%s1816_s0 + $0x3c0] sm:$0xff] }
  0xb4   :  { %v196_v26 = vpop.xlane.xlu1 %195  ;;  %v193_v27 = vpop.xlane.xlu0 %192 }
  0xb5   :  { %v540_v30 = vmul.f32 0.015625, %v196_v26  ;;  %v539_v31 = vmul.f32 0.015625, %v193_v27 }
  0xb7   :  { %669 = vst.msk [vmem:[%s1817_s1 + $0x98] sm:$0xff] %vm649_vm1, %v540_v30  ;;  %668 = vst.msk [vmem:[%s1817_s1 + $0x90] sm:$0xff] %vm649_vm1, %v539_v31  ;;  %411 = vadd.xlane.f32.xlu1 %v410_v28  ;;  %408 = vadd.xlane.f32.xlu0 %v407_v29  ;;  %v458_v28 = vsel %vm136_vm0, %v115_v24, 0.0  ;;  %v455_v29 = vsel %vm136_vm0, %v114_v25, 0.0  ;;  %v131_v24 = vld [vmem:[%s1816_s0 + $0x3d8] sm:$0xff]  ;;  %v130_v25 = vld [vmem:[%s1816_s0 + $0x3d0] sm:$0xff] }
  0xb8   :  { %v202_v34 = vpop.xlane.xlu1 %201  ;;  %v199_v35 = vpop.xlane.xlu0 %198 }
  0xb9   :  { %v542_v38 = vmul.f32 0.015625, %v202_v34  ;;  %v541_v39 = vmul.f32 0.015625, %v199_v35 }
  0xbb   :  { %671 = vst.msk [vmem:[%s1817_s1 + $0xa8] sm:$0xff] %vm649_vm1, %v542_v38  ;;  %670 = vst.msk [vmem:[%s1817_s1 + $0xa0] sm:$0xff] %vm649_vm1, %v541_v39  ;;  %417 = vadd.xlane.f32.xlu1 %v416_v36  ;;  %414 = vadd.xlane.f32.xlu0 %v413_v37  ;;  %v464_v36 = vsel %vm136_vm0, %v117_v32, 0.0  ;;  %v461_v37 = vsel %vm136_vm0, %v116_v33, 0.0  ;;  %v133_v32 = vld [vmem:[%s1816_s0 + $0x3e8] sm:$0xff]  ;;  %v132_v33 = vld [vmem:[%s1816_s0 + $0x3e0] sm:$0xff] }
  0xbc   :  { %v208_v42 = vpop.xlane.xlu1 %207  ;;  %v205_v43 = vpop.xlane.xlu0 %204 }
  0xbd   :  { %v544_v46 = vmul.f32 0.015625, %v208_v42  ;;  %v543_v47 = vmul.f32 0.015625, %v205_v43 }
  0xbf   :  { %673 = vst.msk [vmem:[%s1817_s1 + $0xb8] sm:$0xff] %vm649_vm1, %v544_v46  ;;  %672 = vst.msk [vmem:[%s1817_s1 + $0xb0] sm:$0xff] %vm649_vm1, %v543_v47  ;;  %423 = vadd.xlane.f32.xlu1 %v422_v44  ;;  %420 = vadd.xlane.f32.xlu0 %v419_v45  ;;  %v470_v44 = vsel %vm136_vm0, %v119_v40, 0.0  ;;  %v467_v45 = vsel %vm136_vm0, %v118_v41, 0.0  ;;  %v135_v40 = vld [vmem:[%s1816_s0 + $0x3f8] sm:$0xff]  ;;  %v134_v41 = vld [vmem:[%s1816_s0 + $0x3f0] sm:$0xff] }
  0xc0   :  { %v214_v50 = vpop.xlane.xlu1 %213  ;;  %v211_v51 = vpop.xlane.xlu0 %210 }
  0xc1   :  { %v546_v54 = vmul.f32 0.015625, %v214_v50  ;;  %v545_v55 = vmul.f32 0.015625, %v211_v51 }
  0xc3   :  { %675 = vst.msk [vmem:[%s1817_s1 + $0xc8] sm:$0xff] %vm649_vm1, %v546_v54  ;;  %674 = vst.msk [vmem:[%s1817_s1 + $0xc0] sm:$0xff] %vm649_vm1, %v545_v55  ;;  %429 = vadd.xlane.f32.xlu1 %v428_v52  ;;  %426 = vadd.xlane.f32.xlu0 %v425_v53  ;;  %v476_v52 = vsel %vm136_vm0, %v121_v48, 0.0  ;;  %v473_v53 = vsel %vm136_vm0, %v120_v49, 0.0 }
  0xc4   :  { %v220_v58 = vpop.xlane.xlu1 %219  ;;  %v217_v59 = vpop.xlane.xlu0 %216 }
  0xc5   :  { %v548_v62 = vmul.f32 0.015625, %v220_v58  ;;  %v547_v63 = vmul.f32 0.015625, %v217_v59 }
  0xc7   :  { %677 = vst.msk [vmem:[%s1817_s1 + $0xd8] sm:$0xff] %vm649_vm1, %v548_v62  ;;  %676 = vst.msk [vmem:[%s1817_s1 + $0xd0] sm:$0xff] %vm649_vm1, %v547_v63  ;;  %435 = vadd.xlane.f32.xlu1 %v434_v60  ;;  %432 = vadd.xlane.f32.xlu0 %v431_v61  ;;  %v482_v60 = vsel %vm136_vm0, %v123_v56, 0.0  ;;  %v479_v61 = vsel %vm136_vm0, %v122_v57, 0.0 }
  0xc8   :  { %v226_v2 = vpop.xlane.xlu1 %225  ;;  %v223_v3 = vpop.xlane.xlu0 %222 }
  0xc9   :  { %v550_v6 = vmul.f32 0.015625, %v226_v2  ;;  %v549_v7 = vmul.f32 0.015625, %v223_v3 }
  0xcb   :  { %679 = vst.msk [vmem:[%s1817_s1 + $0xe8] sm:$0xff] %vm649_vm1, %v550_v6  ;;  %678 = vst.msk [vmem:[%s1817_s1 + $0xe0] sm:$0xff] %vm649_vm1, %v549_v7  ;;  %441 = vadd.xlane.f32.xlu1 %v440_v4  ;;  %438 = vadd.xlane.f32.xlu0 %v437_v5  ;;  %v488_v4 = vsel %vm136_vm0, %v125_v0, 0.0  ;;  %v485_v5 = vsel %vm136_vm0, %v124_v1, 0.0 }
  0xcc   :  { %v232_v10 = vpop.xlane.xlu1 %231  ;;  %v229_v11 = vpop.xlane.xlu0 %228 }
  0xcd   :  { %v552_v14 = vmul.f32 0.015625, %v232_v10  ;;  %v551_v15 = vmul.f32 0.015625, %v229_v11 }
  0xcf   :  { %681 = vst.msk [vmem:[%s1817_s1 + $0xf8] sm:$0xff] %vm649_vm1, %v552_v14  ;;  %680 = vst.msk [vmem:[%s1817_s1 + $0xf0] sm:$0xff] %vm649_vm1, %v551_v15  ;;  %447 = vadd.xlane.f32.xlu1 %v446_v12  ;;  %444 = vadd.xlane.f32.xlu0 %v443_v13  ;;  %v494_v12 = vsel %vm136_vm0, %v127_v8, 0.0  ;;  %v491_v13 = vsel %vm136_vm0, %v126_v9, 0.0 }
  0xd0   :  { %v238_v18 = vpop.xlane.xlu1 %237  ;;  %v235_v19 = vpop.xlane.xlu0 %234 }
  0xd1   :  { %v554_v22 = vmul.f32 0.015625, %v238_v18  ;;  %v553_v23 = vmul.f32 0.015625, %v235_v19 }
  0xd3   :  { %683 = vst.msk [vmem:[%s1817_s1 + $0x108] sm:$0xff] %vm649_vm1, %v554_v22  ;;  %682 = vst.msk [vmem:[%s1817_s1 + $0x100] sm:$0xff] %vm649_vm1, %v553_v23  ;;  %453 = vadd.xlane.f32.xlu1 %v452_v20  ;;  %450 = vadd.xlane.f32.xlu0 %v449_v21  ;;  %v500_v20 = vsel %vm136_vm0, %v129_v16, 0.0  ;;  %v497_v21 = vsel %vm136_vm0, %v128_v17, 0.0 }
  0xd4   :  { %v244_v26 = vpop.xlane.xlu1 %243  ;;  %v241_v27 = vpop.xlane.xlu0 %240 }
  0xd5   :  { %v556_v30 = vmul.f32 0.015625, %v244_v26  ;;  %v555_v31 = vmul.f32 0.015625, %v241_v27 }
  0xd7   :  { %685 = vst.msk [vmem:[%s1817_s1 + $0x118] sm:$0xff] %vm649_vm1, %v556_v30  ;;  %684 = vst.msk [vmem:[%s1817_s1 + $0x110] sm:$0xff] %vm649_vm1, %v555_v31  ;;  %459 = vadd.xlane.f32.xlu1 %v458_v28  ;;  %456 = vadd.xlane.f32.xlu0 %v455_v29  ;;  %v506_v28 = vsel %vm136_vm0, %v131_v24, 0.0  ;;  %v503_v29 = vsel %vm136_vm0, %v130_v25, 0.0 }
  0xd8   :  { %v250_v34 = vpop.xlane.xlu1 %249  ;;  %v247_v35 = vpop.xlane.xlu0 %246 }
  0xd9   :  { %v558_v38 = vmul.f32 0.015625, %v250_v34  ;;  %v557_v39 = vmul.f32 0.015625, %v247_v35 }
  0xdb   :  { %687 = vst.msk [vmem:[%s1817_s1 + $0x128] sm:$0xff] %vm649_vm1, %v558_v38  ;;  %686 = vst.msk [vmem:[%s1817_s1 + $0x120] sm:$0xff] %vm649_vm1, %v557_v39  ;;  %465 = vadd.xlane.f32.xlu1 %v464_v36  ;;  %462 = vadd.xlane.f32.xlu0 %v461_v37  ;;  %v512_v36 = vsel %vm136_vm0, %v133_v32, 0.0  ;;  %v509_v37 = vsel %vm136_vm0, %v132_v33, 0.0 }
  0xdc   :  { %v256_v42 = vpop.xlane.xlu1 %255  ;;  %v253_v43 = vpop.xlane.xlu0 %252 }
  0xdd   :  { %v560_v46 = vmul.f32 0.015625, %v256_v42  ;;  %v559_v47 = vmul.f32 0.015625, %v253_v43 }
  0xdf   :  { %689 = vst.msk [vmem:[%s1817_s1 + $0x138] sm:$0xff] %vm649_vm1, %v560_v46  ;;  %688 = vst.msk [vmem:[%s1817_s1 + $0x130] sm:$0xff] %vm649_vm1, %v559_v47  ;;  %471 = vadd.xlane.f32.xlu1 %v470_v44  ;;  %468 = vadd.xlane.f32.xlu0 %v467_v45  ;;  %v518_v44 = vsel %vm136_vm0, %v135_v40, 0.0  ;;  %v515_v45 = vsel %vm136_vm0, %v134_v41, 0.0 }
  0xe0   :  { %v262_v50 = vpop.xlane.xlu1 %261  ;;  %v259_v51 = vpop.xlane.xlu0 %258 }
  0xe1   :  { %v562_v54 = vmul.f32 0.015625, %v262_v50  ;;  %v561_v55 = vmul.f32 0.015625, %v259_v51 }
  0xe3   :  { %691 = vst.msk [vmem:[%s1817_s1 + $0x148] sm:$0xff] %vm649_vm1, %v562_v54  ;;  %690 = vst.msk [vmem:[%s1817_s1 + $0x140] sm:$0xff] %vm649_vm1, %v561_v55  ;;  %477 = vadd.xlane.f32.xlu1 %v476_v52  ;;  %474 = vadd.xlane.f32.xlu0 %v473_v53 }
  0xe4   :  { %v268_v58 = vpop.xlane.xlu1 %267  ;;  %v265_v59 = vpop.xlane.xlu0 %264 }
  0xe5   :  { %v564_v62 = vmul.f32 0.015625, %v268_v58  ;;  %v563_v63 = vmul.f32 0.015625, %v265_v59 }
  0xe7   :  { %693 = vst.msk [vmem:[%s1817_s1 + $0x158] sm:$0xff] %vm649_vm1, %v564_v62  ;;  %692 = vst.msk [vmem:[%s1817_s1 + $0x150] sm:$0xff] %vm649_vm1, %v563_v63  ;;  %483 = vadd.xlane.f32.xlu1 %v482_v60  ;;  %480 = vadd.xlane.f32.xlu0 %v479_v61 }
  0xe8   :  { %v274_v2 = vpop.xlane.xlu1 %273  ;;  %v271_v3 = vpop.xlane.xlu0 %270 }
  0xe9   :  { %v566_v6 = vmul.f32 0.015625, %v274_v2  ;;  %v565_v7 = vmul.f32 0.015625, %v271_v3 }
  0xeb   :  { %695 = vst.msk [vmem:[%s1817_s1 + $0x168] sm:$0xff] %vm649_vm1, %v566_v6  ;;  %694 = vst.msk [vmem:[%s1817_s1 + $0x160] sm:$0xff] %vm649_vm1, %v565_v7  ;;  %489 = vadd.xlane.f32.xlu1 %v488_v4  ;;  %486 = vadd.xlane.f32.xlu0 %v485_v5 }
  0xec   :  { %v280_v10 = vpop.xlane.xlu1 %279  ;;  %v277_v11 = vpop.xlane.xlu0 %276 }
  0xed   :  { %v568_v14 = vmul.f32 0.015625, %v280_v10  ;;  %v567_v15 = vmul.f32 0.015625, %v277_v11 }
  0xef   :  { %697 = vst.msk [vmem:[%s1817_s1 + $0x178] sm:$0xff] %vm649_vm1, %v568_v14  ;;  %696 = vst.msk [vmem:[%s1817_s1 + $0x170] sm:$0xff] %vm649_vm1, %v567_v15  ;;  %495 = vadd.xlane.f32.xlu1 %v494_v12  ;;  %492 = vadd.xlane.f32.xlu0 %v491_v13 }
  0xf0   :  { %v286_v18 = vpop.xlane.xlu1 %285  ;;  %v283_v19 = vpop.xlane.xlu0 %282 }
  0xf1   :  { %v570_v22 = vmul.f32 0.015625, %v286_v18  ;;  %v569_v23 = vmul.f32 0.015625, %v283_v19 }
  0xf3   :  { %699 = vst.msk [vmem:[%s1817_s1 + $0x188] sm:$0xff] %vm649_vm1, %v570_v22  ;;  %698 = vst.msk [vmem:[%s1817_s1 + $0x180] sm:$0xff] %vm649_vm1, %v569_v23  ;;  %501 = vadd.xlane.f32.xlu1 %v500_v20  ;;  %498 = vadd.xlane.f32.xlu0 %v497_v21 }
  0xf4   :  { %v292_v26 = vpop.xlane.xlu1 %291  ;;  %v289_v27 = vpop.xlane.xlu0 %288 }
  0xf5   :  { %v572_v30 = vmul.f32 0.015625, %v292_v26  ;;  %v571_v31 = vmul.f32 0.015625, %v289_v27 }
  0xf7   :  { %701 = vst.msk [vmem:[%s1817_s1 + $0x198] sm:$0xff] %vm649_vm1, %v572_v30  ;;  %700 = vst.msk [vmem:[%s1817_s1 + $0x190] sm:$0xff] %vm649_vm1, %v571_v31  ;;  %507 = vadd.xlane.f32.xlu1 %v506_v28  ;;  %504 = vadd.xlane.f32.xlu0 %v503_v29 }
  0xf8   :  { %v298_v34 = vpop.xlane.xlu1 %297  ;;  %v295_v35 = vpop.xlane.xlu0 %294 }
  0xf9   :  { %v574_v38 = vmul.f32 0.015625, %v298_v34  ;;  %v573_v39 = vmul.f32 0.015625, %v295_v35 }
  0xfb   :  { %703 = vst.msk [vmem:[%s1817_s1 + $0x1a8] sm:$0xff] %vm649_vm1, %v574_v38  ;;  %702 = vst.msk [vmem:[%s1817_s1 + $0x1a0] sm:$0xff] %vm649_vm1, %v573_v39  ;;  %513 = vadd.xlane.f32.xlu1 %v512_v36  ;;  %510 = vadd.xlane.f32.xlu0 %v509_v37 }
  0xfc   :  { %v304_v42 = vpop.xlane.xlu1 %303  ;;  %v301_v43 = vpop.xlane.xlu0 %300 }
  0xfd   :  { %v576_v46 = vmul.f32 0.015625, %v304_v42  ;;  %v575_v47 = vmul.f32 0.015625, %v301_v43 }
  0xff   :  { %705 = vst.msk [vmem:[%s1817_s1 + $0x1b8] sm:$0xff] %vm649_vm1, %v576_v46  ;;  %704 = vst.msk [vmem:[%s1817_s1 + $0x1b0] sm:$0xff] %vm649_vm1, %v575_v47  ;;  %519 = vadd.xlane.f32.xlu1 %v518_v44  ;;  %516 = vadd.xlane.f32.xlu0 %v515_v45 }
 0x100   :  { %v310_v48 = vpop.xlane.xlu1 %309  ;;  %v307_v49 = vpop.xlane.xlu0 %306 }
 0x101   :  { %v578_v50 = vmul.f32 0.015625, %v310_v48  ;;  %v577_v51 = vmul.f32 0.015625, %v307_v49 }
 0x103   :  { %707 = vst.msk [vmem:[%s1817_s1 + $0x1c8] sm:$0xff] %vm649_vm1, %v578_v50  ;;  %706 = vst.msk [vmem:[%s1817_s1 + $0x1c0] sm:$0xff] %vm649_vm1, %v577_v51 }
 0x104   :  { %v316_v52 = vpop.xlane.xlu1 %315  ;;  %v313_v53 = vpop.xlane.xlu0 %312 }
 0x105   :  { %v580_v54 = vmul.f32 0.015625, %v316_v52  ;;  %v579_v55 = vmul.f32 0.015625, %v313_v53 }
 0x107   :  { %709 = vst.msk [vmem:[%s1817_s1 + $0x1d8] sm:$0xff] %vm649_vm1, %v580_v54  ;;  %708 = vst.msk [vmem:[%s1817_s1 + $0x1d0] sm:$0xff] %vm649_vm1, %v579_v55 }
 0x108   :  { %v322_v56 = vpop.xlane.xlu1 %321  ;;  %v319_v57 = vpop.xlane.xlu0 %318 }
 0x109   :  { %v582_v58 = vmul.f32 0.015625, %v322_v56  ;;  %v581_v59 = vmul.f32 0.015625, %v319_v57 }
 0x10b   :  { %711 = vst.msk [vmem:[%s1817_s1 + $0x1e8] sm:$0xff] %vm649_vm1, %v582_v58  ;;  %710 = vst.msk [vmem:[%s1817_s1 + $0x1e0] sm:$0xff] %vm649_vm1, %v581_v59 }
 0x10c   :  { %v328_v60 = vpop.xlane.xlu1 %327  ;;  %v325_v61 = vpop.xlane.xlu0 %324 }
 0x10d   :  { %v584_v62 = vmul.f32 0.015625, %v328_v60  ;;  %v583_v63 = vmul.f32 0.015625, %v325_v61 }
 0x10f   :  { %713 = vst.msk [vmem:[%s1817_s1 + $0x1f8] sm:$0xff] %vm649_vm1, %v584_v62  ;;  %712 = vst.msk [vmem:[%s1817_s1 + $0x1f0] sm:$0xff] %vm649_vm1, %v583_v63 }
 0x110   :  { %v334_v0 = vpop.xlane.xlu1 %333  ;;  %v331_v1 = vpop.xlane.xlu0 %330 }
 0x111   :  { %v586_v2 = vmul.f32 0.015625, %v334_v0  ;;  %v585_v3 = vmul.f32 0.015625, %v331_v1 }
 0x113   :  { %715 = vst.msk [vmem:[%s1817_s1 + $0x208] sm:$0xff] %vm649_vm1, %v586_v2  ;;  %714 = vst.msk [vmem:[%s1817_s1 + $0x200] sm:$0xff] %vm649_vm1, %v585_v3 }
 0x114   :  { %v340_v4 = vpop.xlane.xlu1 %339  ;;  %v337_v5 = vpop.xlane.xlu0 %336 }
 0x115   :  { %v588_v6 = vmul.f32 0.015625, %v340_v4  ;;  %v587_v7 = vmul.f32 0.015625, %v337_v5 }
 0x117   :  { %717 = vst.msk [vmem:[%s1817_s1 + $0x218] sm:$0xff] %vm649_vm1, %v588_v6  ;;  %716 = vst.msk [vmem:[%s1817_s1 + $0x210] sm:$0xff] %vm649_vm1, %v587_v7 }
 0x118   :  { %v346_v8 = vpop.xlane.xlu1 %345  ;;  %v343_v9 = vpop.xlane.xlu0 %342 }
 0x119   :  { %v590_v10 = vmul.f32 0.015625, %v346_v8  ;;  %v589_v11 = vmul.f32 0.015625, %v343_v9 }
 0x11b   :  { %719 = vst.msk [vmem:[%s1817_s1 + $0x228] sm:$0xff] %vm649_vm1, %v590_v10  ;;  %718 = vst.msk [vmem:[%s1817_s1 + $0x220] sm:$0xff] %vm649_vm1, %v589_v11 }
 0x11c   :  { %v352_v12 = vpop.xlane.xlu1 %351  ;;  %v349_v13 = vpop.xlane.xlu0 %348 }
 0x11d   :  { %v592_v14 = vmul.f32 0.015625, %v352_v12  ;;  %v591_v15 = vmul.f32 0.015625, %v349_v13 }
 0x11f   :  { %721 = vst.msk [vmem:[%s1817_s1 + $0x238] sm:$0xff] %vm649_vm1, %v592_v14  ;;  %720 = vst.msk [vmem:[%s1817_s1 + $0x230] sm:$0xff] %vm649_vm1, %v591_v15 }
 0x120   :  { %v358_v16 = vpop.xlane.xlu1 %357  ;;  %v355_v17 = vpop.xlane.xlu0 %354 }
 0x121   :  { %v594_v18 = vmul.f32 0.015625, %v358_v16  ;;  %v593_v19 = vmul.f32 0.015625, %v355_v17 }
 0x123   :  { %723 = vst.msk [vmem:[%s1817_s1 + $0x248] sm:$0xff] %vm649_vm1, %v594_v18  ;;  %722 = vst.msk [vmem:[%s1817_s1 + $0x240] sm:$0xff] %vm649_vm1, %v593_v19 }
 0x124   :  { %v364_v20 = vpop.xlane.xlu1 %363  ;;  %v361_v21 = vpop.xlane.xlu0 %360 }
 0x125   :  { %v596_v22 = vmul.f32 0.015625, %v364_v20  ;;  %v595_v23 = vmul.f32 0.015625, %v361_v21 }
 0x127   :  { %725 = vst.msk [vmem:[%s1817_s1 + $0x258] sm:$0xff] %vm649_vm1, %v596_v22  ;;  %724 = vst.msk [vmem:[%s1817_s1 + $0x250] sm:$0xff] %vm649_vm1, %v595_v23 }
 0x128   :  { %v370_v24 = vpop.xlane.xlu1 %369  ;;  %v367_v25 = vpop.xlane.xlu0 %366 }
 0x129   :  { %v598_v26 = vmul.f32 0.015625, %v370_v24  ;;  %v597_v27 = vmul.f32 0.015625, %v367_v25 }
 0x12b   :  { %727 = vst.msk [vmem:[%s1817_s1 + $0x268] sm:$0xff] %vm649_vm1, %v598_v26  ;;  %726 = vst.msk [vmem:[%s1817_s1 + $0x260] sm:$0xff] %vm649_vm1, %v597_v27 }
 0x12c   :  { %v376_v28 = vpop.xlane.xlu1 %375  ;;  %v373_v29 = vpop.xlane.xlu0 %372 }
 0x12d   :  { %v600_v30 = vmul.f32 0.015625, %v376_v28  ;;  %v599_v31 = vmul.f32 0.015625, %v373_v29 }
 0x12f   :  { %729 = vst.msk [vmem:[%s1817_s1 + $0x278] sm:$0xff] %vm649_vm1, %v600_v30  ;;  %728 = vst.msk [vmem:[%s1817_s1 + $0x270] sm:$0xff] %vm649_vm1, %v599_v31 }
 0x130   :  { %v382_v32 = vpop.xlane.xlu1 %381  ;;  %v379_v33 = vpop.xlane.xlu0 %378 }
 0x131   :  { %v602_v34 = vmul.f32 0.015625, %v382_v32  ;;  %v601_v35 = vmul.f32 0.015625, %v379_v33 }
 0x133   :  { %731 = vst.msk [vmem:[%s1817_s1 + $0x288] sm:$0xff] %vm649_vm1, %v602_v34  ;;  %730 = vst.msk [vmem:[%s1817_s1 + $0x280] sm:$0xff] %vm649_vm1, %v601_v35 }
 0x134   :  { %v388_v36 = vpop.xlane.xlu1 %387  ;;  %v385_v37 = vpop.xlane.xlu0 %384 }
 0x135   :  { %v604_v38 = vmul.f32 0.015625, %v388_v36  ;;  %v603_v39 = vmul.f32 0.015625, %v385_v37 }
 0x137   :  { %733 = vst.msk [vmem:[%s1817_s1 + $0x298] sm:$0xff] %vm649_vm1, %v604_v38  ;;  %732 = vst.msk [vmem:[%s1817_s1 + $0x290] sm:$0xff] %vm649_vm1, %v603_v39 }
 0x138   :  { %v394_v40 = vpop.xlane.xlu1 %393  ;;  %v391_v41 = vpop.xlane.xlu0 %390 }
 0x139   :  { %v606_v42 = vmul.f32 0.015625, %v394_v40  ;;  %v605_v43 = vmul.f32 0.015625, %v391_v41 }
 0x13b   :  { %735 = vst.msk [vmem:[%s1817_s1 + $0x2a8] sm:$0xff] %vm649_vm1, %v606_v42  ;;  %734 = vst.msk [vmem:[%s1817_s1 + $0x2a0] sm:$0xff] %vm649_vm1, %v605_v43 }
 0x13c   :  { %v400_v44 = vpop.xlane.xlu1 %399  ;;  %v397_v45 = vpop.xlane.xlu0 %396 }
 0x13d   :  { %v608_v46 = vmul.f32 0.015625, %v400_v44  ;;  %v607_v47 = vmul.f32 0.015625, %v397_v45 }
 0x13f   :  { %737 = vst.msk [vmem:[%s1817_s1 + $0x2b8] sm:$0xff] %vm649_vm1, %v608_v46  ;;  %736 = vst.msk [vmem:[%s1817_s1 + $0x2b0] sm:$0xff] %vm649_vm1, %v607_v47 }
 0x140   :  { %v406_v48 = vpop.xlane.xlu1 %405  ;;  %v403_v49 = vpop.xlane.xlu0 %402 }
 0x141   :  { %v610_v50 = vmul.f32 0.015625, %v406_v48  ;;  %v609_v51 = vmul.f32 0.015625, %v403_v49 }
 0x143   :  { %739 = vst.msk [vmem:[%s1817_s1 + $0x2c8] sm:$0xff] %vm649_vm1, %v610_v50  ;;  %738 = vst.msk [vmem:[%s1817_s1 + $0x2c0] sm:$0xff] %vm649_vm1, %v609_v51 }
 0x144   :  { %v412_v52 = vpop.xlane.xlu1 %411  ;;  %v409_v53 = vpop.xlane.xlu0 %408 }
 0x145   :  { %v612_v54 = vmul.f32 0.015625, %v412_v52  ;;  %v611_v55 = vmul.f32 0.015625, %v409_v53 }
 0x147   :  { %741 = vst.msk [vmem:[%s1817_s1 + $0x2d8] sm:$0xff] %vm649_vm1, %v612_v54  ;;  %740 = vst.msk [vmem:[%s1817_s1 + $0x2d0] sm:$0xff] %vm649_vm1, %v611_v55 }
 0x148   :  { %v418_v56 = vpop.xlane.xlu1 %417  ;;  %v415_v57 = vpop.xlane.xlu0 %414 }
 0x149   :  { %v614_v58 = vmul.f32 0.015625, %v418_v56  ;;  %v613_v59 = vmul.f32 0.015625, %v415_v57 }
 0x14b   :  { %743 = vst.msk [vmem:[%s1817_s1 + $0x2e8] sm:$0xff] %vm649_vm1, %v614_v58  ;;  %742 = vst.msk [vmem:[%s1817_s1 + $0x2e0] sm:$0xff] %vm649_vm1, %v613_v59 }
 0x14c   :  { %v424_v60 = vpop.xlane.xlu1 %423  ;;  %v421_v61 = vpop.xlane.xlu0 %420 }
 0x14d   :  { %v616_v62 = vmul.f32 0.015625, %v424_v60  ;;  %v615_v63 = vmul.f32 0.015625, %v421_v61 }
 0x14f   :  { %745 = vst.msk [vmem:[%s1817_s1 + $0x2f8] sm:$0xff] %vm649_vm1, %v616_v62  ;;  %744 = vst.msk [vmem:[%s1817_s1 + $0x2f0] sm:$0xff] %vm649_vm1, %v615_v63 }
 0x150   :  { %v430_v0 = vpop.xlane.xlu1 %429  ;;  %v427_v1 = vpop.xlane.xlu0 %426 }
 0x151   :  { %v618_v2 = vmul.f32 0.015625, %v430_v0  ;;  %v617_v3 = vmul.f32 0.015625, %v427_v1 }
 0x153   :  { %747 = vst.msk [vmem:[%s1817_s1 + $0x308] sm:$0xff] %vm649_vm1, %v618_v2  ;;  %746 = vst.msk [vmem:[%s1817_s1 + $0x300] sm:$0xff] %vm649_vm1, %v617_v3 }
 0x154   :  { %v436_v4 = vpop.xlane.xlu1 %435  ;;  %v433_v5 = vpop.xlane.xlu0 %432 }
 0x155   :  { %v620_v6 = vmul.f32 0.015625, %v436_v4  ;;  %v619_v7 = vmul.f32 0.015625, %v433_v5 }
 0x157   :  { %749 = vst.msk [vmem:[%s1817_s1 + $0x318] sm:$0xff] %vm649_vm1, %v620_v6  ;;  %748 = vst.msk [vmem:[%s1817_s1 + $0x310] sm:$0xff] %vm649_vm1, %v619_v7 }
 0x158   :  { %v442_v8 = vpop.xlane.xlu1 %441  ;;  %v439_v9 = vpop.xlane.xlu0 %438 }
 0x159   :  { %v622_v10 = vmul.f32 0.015625, %v442_v8  ;;  %v621_v11 = vmul.f32 0.015625, %v439_v9 }
 0x15b   :  { %751 = vst.msk [vmem:[%s1817_s1 + $0x328] sm:$0xff] %vm649_vm1, %v622_v10  ;;  %750 = vst.msk [vmem:[%s1817_s1 + $0x320] sm:$0xff] %vm649_vm1, %v621_v11 }
 0x15c   :  { %v448_v12 = vpop.xlane.xlu1 %447  ;;  %v445_v13 = vpop.xlane.xlu0 %444 }
 0x15d   :  { %v624_v14 = vmul.f32 0.015625, %v448_v12  ;;  %v623_v15 = vmul.f32 0.015625, %v445_v13 }
 0x15f   :  { %753 = vst.msk [vmem:[%s1817_s1 + $0x338] sm:$0xff] %vm649_vm1, %v624_v14  ;;  %752 = vst.msk [vmem:[%s1817_s1 + $0x330] sm:$0xff] %vm649_vm1, %v623_v15 }
 0x160   :  { %v454_v16 = vpop.xlane.xlu1 %453  ;;  %v451_v17 = vpop.xlane.xlu0 %450 }
 0x161   :  { %v626_v18 = vmul.f32 0.015625, %v454_v16  ;;  %v625_v19 = vmul.f32 0.015625, %v451_v17 }
 0x163   :  { %755 = vst.msk [vmem:[%s1817_s1 + $0x348] sm:$0xff] %vm649_vm1, %v626_v18  ;;  %754 = vst.msk [vmem:[%s1817_s1 + $0x340] sm:$0xff] %vm649_vm1, %v625_v19 }
 0x164   :  { %v460_v20 = vpop.xlane.xlu1 %459  ;;  %v457_v21 = vpop.xlane.xlu0 %456 }
 0x165   :  { %v628_v22 = vmul.f32 0.015625, %v460_v20  ;;  %v627_v23 = vmul.f32 0.015625, %v457_v21 }
 0x167   :  { %757 = vst.msk [vmem:[%s1817_s1 + $0x358] sm:$0xff] %vm649_vm1, %v628_v22  ;;  %756 = vst.msk [vmem:[%s1817_s1 + $0x350] sm:$0xff] %vm649_vm1, %v627_v23 }
 0x168   :  { %v466_v24 = vpop.xlane.xlu1 %465  ;;  %v463_v25 = vpop.xlane.xlu0 %462 }
 0x169   :  { %v630_v26 = vmul.f32 0.015625, %v466_v24  ;;  %v629_v27 = vmul.f32 0.015625, %v463_v25 }
 0x16b   :  { %759 = vst.msk [vmem:[%s1817_s1 + $0x368] sm:$0xff] %vm649_vm1, %v630_v26  ;;  %758 = vst.msk [vmem:[%s1817_s1 + $0x360] sm:$0xff] %vm649_vm1, %v629_v27 }
 0x16c   :  { %v472_v28 = vpop.xlane.xlu1 %471  ;;  %v469_v29 = vpop.xlane.xlu0 %468 }
 0x16d   :  { %v632_v30 = vmul.f32 0.015625, %v472_v28  ;;  %v631_v31 = vmul.f32 0.015625, %v469_v29 }
 0x16f   :  { %761 = vst.msk [vmem:[%s1817_s1 + $0x378] sm:$0xff] %vm649_vm1, %v632_v30  ;;  %760 = vst.msk [vmem:[%s1817_s1 + $0x370] sm:$0xff] %vm649_vm1, %v631_v31 }
 0x170   :  { %v478_v32 = vpop.xlane.xlu1 %477  ;;  %v475_v33 = vpop.xlane.xlu0 %474 }
 0x171   :  { %v634_v34 = vmul.f32 0.015625, %v478_v32  ;;  %v633_v35 = vmul.f32 0.015625, %v475_v33 }
 0x173   :  { %763 = vst.msk [vmem:[%s1817_s1 + $0x388] sm:$0xff] %vm649_vm1, %v634_v34  ;;  %762 = vst.msk [vmem:[%s1817_s1 + $0x380] sm:$0xff] %vm649_vm1, %v633_v35 }
 0x174   :  { %v484_v36 = vpop.xlane.xlu1 %483  ;;  %v481_v37 = vpop.xlane.xlu0 %480 }
 0x175   :  { %v636_v38 = vmul.f32 0.015625, %v484_v36  ;;  %v635_v39 = vmul.f32 0.015625, %v481_v37 }
 0x177   :  { %765 = vst.msk [vmem:[%s1817_s1 + $0x398] sm:$0xff] %vm649_vm1, %v636_v38  ;;  %764 = vst.msk [vmem:[%s1817_s1 + $0x390] sm:$0xff] %vm649_vm1, %v635_v39 }
 0x178   :  { %v490_v40 = vpop.xlane.xlu1 %489  ;;  %v487_v41 = vpop.xlane.xlu0 %486 }
 0x179   :  { %v638_v42 = vmul.f32 0.015625, %v490_v40  ;;  %v637_v43 = vmul.f32 0.015625, %v487_v41 }
 0x17b   :  { %767 = vst.msk [vmem:[%s1817_s1 + $0x3a8] sm:$0xff] %vm649_vm1, %v638_v42  ;;  %766 = vst.msk [vmem:[%s1817_s1 + $0x3a0] sm:$0xff] %vm649_vm1, %v637_v43 }
 0x17c   :  { %v496_v44 = vpop.xlane.xlu1 %495  ;;  %v493_v45 = vpop.xlane.xlu0 %492 }
 0x17d   :  { %v640_v46 = vmul.f32 0.015625, %v496_v44  ;;  %v639_v47 = vmul.f32 0.015625, %v493_v45 }
 0x17f   :  { %769 = vst.msk [vmem:[%s1817_s1 + $0x3b8] sm:$0xff] %vm649_vm1, %v640_v46  ;;  %768 = vst.msk [vmem:[%s1817_s1 + $0x3b0] sm:$0xff] %vm649_vm1, %v639_v47 }
 0x180   :  { %v502_v48 = vpop.xlane.xlu1 %501  ;;  %v499_v49 = vpop.xlane.xlu0 %498 }
 0x181   :  { %v642_v50 = vmul.f32 0.015625, %v502_v48  ;;  %v641_v51 = vmul.f32 0.015625, %v499_v49 }
 0x183   :  { %771 = vst.msk [vmem:[%s1817_s1 + $0x3c8] sm:$0xff] %vm649_vm1, %v642_v50  ;;  %770 = vst.msk [vmem:[%s1817_s1 + $0x3c0] sm:$0xff] %vm649_vm1, %v641_v51 }
 0x184   :  { %v508_v52 = vpop.xlane.xlu1 %507  ;;  %v505_v53 = vpop.xlane.xlu0 %504 }
 0x185   :  { %v644_v54 = vmul.f32 0.015625, %v508_v52  ;;  %v643_v55 = vmul.f32 0.015625, %v505_v53 }
 0x187   :  { %773 = vst.msk [vmem:[%s1817_s1 + $0x3d8] sm:$0xff] %vm649_vm1, %v644_v54  ;;  %772 = vst.msk [vmem:[%s1817_s1 + $0x3d0] sm:$0xff] %vm649_vm1, %v643_v55 }
 0x188   :  { %v514_v56 = vpop.xlane.xlu1 %513  ;;  %v511_v57 = vpop.xlane.xlu0 %510 }
 0x189   :  { %v646_v58 = vmul.f32 0.015625, %v514_v56  ;;  %v645_v59 = vmul.f32 0.015625, %v511_v57 }
 0x18b   :  { %775 = vst.msk [vmem:[%s1817_s1 + $0x3e8] sm:$0xff] %vm649_vm1, %v646_v58  ;;  %774 = vst.msk [vmem:[%s1817_s1 + $0x3e0] sm:$0xff] %vm649_vm1, %v645_v59 }
 0x18c   :  { %v520_v60 = vpop.xlane.xlu1 %519  ;;  %v517_v61 = vpop.xlane.xlu0 %516 }
 0x18d   :  { %v648_v62 = vmul.f32 0.015625, %v520_v60  ;;  %v647_v63 = vmul.f32 0.015625, %v517_v61 }
 0x18f   :  { %777 = vst.msk [vmem:[%s1817_s1 + $0x3f8] sm:$0xff] %vm649_vm1, %v648_v62  ;;  %776 = vst.msk [vmem:[%s1817_s1 + $0x3f0] sm:$0xff] %vm649_vm1, %v647_v63 }

</bundles_post_ra>
